<compile_context>
chip_gen: v7x
topology: tpu7x:2x2x1
jax: 0.10.0
libtpu: 0.0.40
codegen_flags: <defaults>
</compile_context>

<pallas_src>
import functools
import math

import jax
import jax.numpy as jnp
from jax.experimental import pallas as pl
from jax.experimental.pallas import tpu as pltpu


def _round_up(v: int, m: int) -> int:
    return ((v + m - 1) // m) * m


# ----------------------------------------------------------------------------
# Fused kernel: edge score -> per-graph normalization -> two keep-masks
# ----------------------------------------------------------------------------
def _fused_edge_pool_kernel(xt_ref, w_ref, b_ref, ei_ref, r1_ref, r2_ref,
                            norm_ref, p1_ref, p2_ref, *, epg):
    # 1) Both endpoint-role projections in a single matmul.
    #    w_ref : [2, C]      (row 0 = weights for x[e_src], row 1 = for x[e_dst])
    #    xt_ref: [C, N_pad]  (node axis on lanes, zero padded to a multiple of 128)
    s = jnp.dot(w_ref[...], xt_ref[...],
                preferred_element_type=jnp.float32)          # [2, N_pad]

    # 2) O(E) gather along the lane axis (padded edge slots index node 0 and
    #    are masked out below).
    ei = ei_ref[0]                                           # [2, Epg_pad] int32
    gath = jnp.take_along_axis(s, ei, axis=1)                # [2, Epg_pad]
    raw = gath[0:1, :] + gath[1:2, :] + b_ref[...]           # [1, Epg_pad]

    # 3) F.relu -> F.dropout(p=0.0, eval) is identity -> sigmoid
    score = jax.nn.sigmoid(jnp.maximum(raw, 0.0))            # [1, Epg_pad]

    # 4) Per-graph min/max normalization over the *valid* (unpadded) edges.
    col = jax.lax.broadcasted_iota(jnp.int32, score.shape, 1)
    valid = col < epg
    mn = jnp.min(jnp.where(valid, score, jnp.inf), axis=1, keepdims=True)
    mx = jnp.max(jnp.where(valid, score, -jnp.inf), axis=1, keepdims=True)
    # Plain divide kept (pl.reciprocal(approx=True) is TPU-only and has no
    # interpret/CPU lowering, like the PRNG primitives that broke before).
    norm = jnp.where(valid, (score - mn) / (mx - mn + 1e-6), 0.0)
    norm_ref[0] = norm

    # 5) Two fused random keep-masks: perm = (rate > 1 - norm), padded cols = 0.
    p1_ref[0] = jnp.logical_and(valid, r1_ref[0] > 1.0 - norm).astype(jnp.int32)
    p2_ref[0] = jnp.logical_and(valid, r2_ref[0] > 1.0 - norm).astype(jnp.int32)


# ----------------------------------------------------------------------------
# Glue: dynamic-shape compaction of the keep-mask (torch.nonzero equivalent)
# ----------------------------------------------------------------------------
def _perm_to_edge_index(perm, nodes):
    # TODO(synk): torch.nonzero is dynamically shaped; JAX/Pallas need static
    # shapes, so we pad to the maximum size with -1 (consumers must mask -1).
    rows, cols = jnp.nonzero(perm, size=perm.size, fill_value=-1)
    valid = rows >= 0
    idx0 = jnp.where(valid, cols // nodes + rows * nodes, -1)
    idx1 = jnp.where(valid, jnp.remainder(cols, nodes) + rows * nodes, -1)
    return jnp.stack([idx0, idx1], axis=0).astype(jnp.int32)


# ----------------------------------------------------------------------------
# Full EdgePooling.forward
# ----------------------------------------------------------------------------
def edge_pooling_forward(x, edge_index, batch, weight, bias, num_graphs, key):
    n, c = x.shape
    e = edge_index.shape[1]
    epg = e // num_graphs                 # edges per graph (reference reshape)
    nodes = int(math.sqrt(epg))           # nodes per graph, as in the torch code

    epg_pad = _round_up(epg, 128)         # lane-dense edge axis
    n_pad = _round_up(n, 128)             # lane-dense node axis for the gather

    # ---- wrapper-side layout prep (cheap XLA ops, no HBM round trips of the
    #      scores: everything edge-sized is produced directly by the kernel) ----
    xt = jnp.zeros((c, n_pad), jnp.float32).at[:, :n].set(x.T)          # [C, N_pad]
    w2 = jnp.stack([weight[0, :c], weight[0, c:]], axis=0)              # [2, C]
    b2 = bias.reshape(1, 1).astype(jnp.float32)                         # [1, 1]

    ei_g = edge_index.reshape(2, num_graphs, epg).transpose(1, 0, 2)    # [B, 2, Epg]
    ei_g = jnp.zeros((num_graphs, 2, epg_pad), jnp.int32).at[:, :, :epg].set(ei_g)

    k1, k2 = jax.random.split(key)
    rate1 = jax.random.uniform(k1, (num_graphs, 1, epg_pad), jnp.float32)
    rate2 = jax.random.uniform(k2, (num_graphs, 1, epg_pad), jnp.float32)

    kernel = functools.partial(_fused_edge_pool_kernel, epg=epg)

    norm, perm1, perm2 = pl.pallas_call(
        kernel,
        grid=(num_graphs,),
        in_specs=[
            pl.BlockSpec((c, n_pad), lambda g: (0, 0)),          # x^T (whole)
            pl.BlockSpec((2, c), lambda g: (0, 0)),              # W2
            pl.BlockSpec((1, 1), lambda g: (0, 0)),              # bias
            pl.BlockSpec((1, 2, epg_pad), lambda g: (g, 0, 0)),  # per-graph edges
            pl.BlockSpec((1, 1, epg_pad), lambda g: (g, 0, 0)),  # rate draw 1
            pl.BlockSpec((1, 1, epg_pad), lambda g: (g, 0, 0)),  # rate draw 2
        ],
        out_specs=[
            pl.BlockSpec((1, 1, epg_pad), lambda g: (g, 0, 0)),  # norm scores
            pl.BlockSpec((1, 1, epg_pad), lambda g: (g, 0, 0)),  # keep mask 1
            pl.BlockSpec((1, 1, epg_pad), lambda g: (g, 0, 0)),  # keep mask 2
        ],
        out_shape=(
            jax.ShapeDtypeStruct((num_graphs, 1, epg_pad), jnp.float32),
            jax.ShapeDtypeStruct((num_graphs, 1, epg_pad), jnp.int32),
            jax.ShapeDtypeStruct((num_graphs, 1, epg_pad), jnp.int32),
        ),
        compiler_params=pltpu.CompilerParams(
            dimension_semantics=("parallel",)),   # graphs split across v7x TCs
    )(xt, w2, b2, ei_g, rate1, rate2)

    norm = norm[:, 0, :epg]                       # [B, Epg]
    perm1 = perm1[:, 0, :epg]
    perm2 = perm2[:, 0, :epg]

    new_edge_index1 = _perm_to_edge_index(perm1, nodes)
    new_edge_index2 = _perm_to_edge_index(perm2, nodes)

    # NOTE: the reference forward returns the undefined name `new_edge_score`
    # (a NameError in the original); we return the normalized scores of the
    # first edge_delete_adap call (both calls normalize identically).
    return new_edge_index1, new_edge_index2, batch, norm


if __name__ == "__main__":
    # Small deterministic problem: B=2 graphs, 4 nodes each (fully connected),
    # in_channels=8  =>  N=8, E=32, edges-per-graph=16.
    B, NODES, C = 2, 4, 8
    EPG = NODES * NODES
    E = B * EPG
    N = B * NODES

    key = jax.random.PRNGKey(0)
    kx, kw, kb, krate = jax.random.split(key, 4)

    x = jax.random.normal(kx, (N, C), dtype=jnp.float32)

    src, dst = [], []
    for g in range(B):
        for a in range(NODES):
            for b_ in range(NODES):
                src.append(g * NODES + a)
                dst.append(g * NODES + b_)
    edge_index = jnp.array([src, dst], dtype=jnp.int32)             # [2, E]
    batch = jnp.repeat(jnp.arange(B, dtype=jnp.int32), NODES)       # [N]

    # torch.nn.Linear(2C, 1) default init: U(-1/sqrt(fan_in), 1/sqrt(fan_in))
    bound = 1.0 / math.sqrt(2 * C)
    weight = jax.random.uniform(kw, (1, 2 * C), jnp.float32, -bound, bound)
    bias = jax.random.uniform(kb, (1,), jnp.float32, -bound, bound)

    out = edge_pooling_forward(x, edge_index, batch, weight, bias,
                               num_graphs=B, key=krate)
    out = jax.block_until_ready(out)

    nei1, nei2, batch_out, scores = out
    assert nei1.shape == (2, E) and nei2.shape == (2, E)
    assert batch_out.shape == (N,)
    assert scores.shape == (B, EPG)
    assert bool(jnp.all((scores >= 0.0) & (scores <= 1.0)))
    print("KERNEL_OK")
</pallas_src>

<mosaic_0001>
module attributes {stable_mosaic.version = 11 : i64} {
  func.func @_fused_edge_pool_kernel(%arg0: i32, %arg1: memref<8x128xf32, #tpu.memory_space<vmem>>, %arg2: memref<2x8xf32, #tpu.memory_space<vmem>>, %arg3: memref<1x1xf32, #tpu.memory_space<vmem>>, %arg4: memref<1x2x128xi32, #tpu.memory_space<vmem>>, %arg5: memref<1x1x128xf32, #tpu.memory_space<vmem>>, %arg6: memref<1x1x128xf32, #tpu.memory_space<vmem>>, %arg7: memref<1x1x128xf32, #tpu.memory_space<vmem>>, %arg8: memref<1x1x128xi32, #tpu.memory_space<vmem>>, %arg9: memref<1x1x128xi32, #tpu.memory_space<vmem>>) attributes {dimension_semantics = [#tpu.dimension_semantics<parallel>], iteration_bounds = array<i64: 2>, scalar_prefetch = 0 : i64, scratch_operands = 0 : i64, tpu.core_type = #tpu.core_type<tc>, window_params = [{pipeline_mode = #tpu.pipeline_mode<synchronous>, transform_indices = @transform_0, window_bounds = array<i64: 8, 128>}, {pipeline_mode = #tpu.pipeline_mode<synchronous>, transform_indices = @transform_1, window_bounds = array<i64: 2, 8>}, {pipeline_mode = #tpu.pipeline_mode<synchronous>, transform_indices = @transform_2, window_bounds = array<i64: 1, 1>}, {transform_indices = @transform_3, window_bounds = array<i64: 1, 2, 128>}, {transform_indices = @transform_4, window_bounds = array<i64: 1, 1, 128>}, {transform_indices = @transform_5, window_bounds = array<i64: 1, 1, 128>}, {transform_indices = @transform_6, window_bounds = array<i64: 1, 1, 128>}, {transform_indices = @transform_7, window_bounds = array<i64: 1, 1, 128>}, {transform_indices = @transform_8, window_bounds = array<i64: 1, 1, 128>}]} {
    %c0 = arith.constant 0 : index
    %c0_0 = arith.constant 0 : index
    %0 = vector.load %arg2[%c0, %c0_0] : memref<2x8xf32, #tpu.memory_space<vmem>>, vector<2x8xf32>
    %c0_1 = arith.constant 0 : index
    %c0_2 = arith.constant 0 : index
    %1 = vector.load %arg1[%c0_1, %c0_2] : memref<8x128xf32, #tpu.memory_space<vmem>>, vector<8x128xf32>
    %cst = arith.constant dense<0.000000e+00> : vector<2x128xf32>
    %2 = tpu.matmul %0, %1, %cst {dimension_numbers = #tpu.dot_dimension_numbers<[1], [0], [0], [1], [0, 0, 1, 1], [], []>} : vector<2x8xf32>, vector<8x128xf32>, vector<2x128xf32> -> vector<2x128xf32>
    %c0_3 = arith.constant 0 : index
    %c0_4 = arith.constant 0 : index
    %c0_5 = arith.constant 0 : index
    %3 = vector.load %arg4[%c0_3, %c0_4, %c0_5] : memref<1x2x128xi32, #tpu.memory_space<vmem>>, vector<1x2x128xi32>
    %4 = vector.shape_cast %3 : vector<1x2x128xi32> to vector<2x128xi32>
    %c0_i32 = arith.constant 0 : i32
    %5 = vector.broadcast %c0_i32 : i32 to vector<2x128xi32>
    %6 = arith.cmpi slt, %4, %5 : vector<2x128xi32>
    %c128_i32 = arith.constant 128 : i32
    %7 = vector.broadcast %c128_i32 : i32 to vector<2x128xi32>
    %8 = arith.addi %4, %7 : vector<2x128xi32>
    %9 = arith.select %6, %8, %4 : vector<2x128xi1>, vector<2x128xi32>
    %10 = vector.shape_cast %9 : vector<2x128xi32> to vector<2x128x1xi32>
    %11 = vector.shape_cast %10 : vector<2x128x1xi32> to vector<2x128xi32>
    %12 = tpu.dynamic_gather %2[%11] in [1] : vector<2x128xf32>, vector<2x128xi32> -> vector<2x128xf32>
    %13 = vector.extract_strided_slice %12 {offsets = [0, 0], sizes = [1, 128], strides = [1, 1]} : vector<2x128xf32> to vector<1x128xf32>
    %14 = vector.extract_strided_slice %12 {offsets = [1, 0], sizes = [1, 128], strides = [1, 1]} : vector<2x128xf32> to vector<1x128xf32>
    %15 = arith.addf %13, %14 : vector<1x128xf32>
    %c0_6 = arith.constant 0 : index
    %c0_7 = arith.constant 0 : index
    %16 = vector.load %arg3[%c0_6, %c0_7] : memref<1x1xf32, #tpu.memory_space<vmem>>, vector<1x1xf32>
    %17 = vector.broadcast %16 : vector<1x1xf32> to vector<1x128xf32>
    %18 = arith.addf %15, %17 : vector<1x128xf32>
    %cst_8 = arith.constant 0.000000e+00 : f32
    %19 = vector.broadcast %cst_8 : f32 to vector<1x128xf32>
    %20 = arith.maximumf %18, %19 : vector<1x128xf32>
    %21 = arith.negf %20 : vector<1x128xf32>
    %22 = math.exp %21 : vector<1x128xf32>
    %cst_9 = arith.constant 1.000000e+00 : f32
    %23 = vector.broadcast %cst_9 : f32 to vector<1x128xf32>
    %24 = arith.addf %23, %22 : vector<1x128xf32>
    %25 = arith.divf %23, %24 : vector<1x128xf32>
    %26 = tpu.iota {dimensions = array<i32: 1>} : vector<1x128xi32>
    %c16_i32 = arith.constant 16 : i32
    %27 = vector.broadcast %c16_i32 : i32 to vector<1x128xi32>
    %28 = arith.cmpi slt, %26, %27 : vector<1x128xi32>
    %cst_10 = arith.constant 0x7F800000 : f32
    %29 = vector.broadcast %cst_10 : f32 to vector<1x128xf32>
    %30 = arith.select %28, %25, %29 : vector<1x128xi1>, vector<1x128xf32>
    %cst_11 = arith.constant dense<0x7F800000> : vector<1xf32>
    %31 = vector.multi_reduction <minimumf>, %30, %cst_11 [1] : vector<1x128xf32> to vector<1xf32>
    %32 = vector.shape_cast %31 : vector<1xf32> to vector<1x1xf32>
    %cst_12 = arith.constant 0xFF800000 : f32
    %33 = vector.broadcast %cst_12 : f32 to vector<1x128xf32>
    %34 = arith.select %28, %25, %33 : vector<1x128xi1>, vector<1x128xf32>
    %cst_13 = arith.constant dense<0xFF800000> : vector<1xf32>
    %35 = vector.multi_reduction <maximumf>, %34, %cst_13 [1] : vector<1x128xf32> to vector<1xf32>
    %36 = vector.shape_cast %35 : vector<1xf32> to vector<1x1xf32>
    %37 = vector.broadcast %32 : vector<1x1xf32> to vector<1x128xf32>
    %38 = arith.subf %25, %37 : vector<1x128xf32>
    %39 = arith.subf %36, %32 : vector<1x1xf32>
    %cst_14 = arith.constant 9.99999997E-7 : f32
    %40 = vector.broadcast %cst_14 : f32 to vector<1x1xf32>
    %41 = arith.addf %39, %40 : vector<1x1xf32>
    %42 = vector.broadcast %41 : vector<1x1xf32> to vector<1x128xf32>
    %43 = arith.divf %38, %42 : vector<1x128xf32>
    %cst_15 = arith.constant 0.000000e+00 : f32
    %44 = vector.broadcast %cst_15 : f32 to vector<1x128xf32>
    %45 = arith.select %28, %43, %44 : vector<1x128xi1>, vector<1x128xf32>
    %c0_16 = arith.constant 0 : index
    %c0_17 = arith.constant 0 : index
    %c0_18 = arith.constant 0 : index
    %46 = vector.load %arg7[%c0_16, %c0_17, %c0_18] : memref<1x1x128xf32, #tpu.memory_space<vmem>>, vector<1x1x128xf32>
    %47 = vector.shape_cast %46 : vector<1x1x128xf32> to vector<1x128xf32>
    %48 = vector.shape_cast %45 : vector<1x128xf32> to vector<1x1x128xf32>
    tpu.vector_store %arg7[%c0_16, %c0_17, %c0_18], %48 {strides = array<i32>} : memref<1x1x128xf32, #tpu.memory_space<vmem>>, vector<1x1x128xf32>,
    %c0_19 = arith.constant 0 : index
    %c0_20 = arith.constant 0 : index
    %c0_21 = arith.constant 0 : index
    %49 = vector.load %arg5[%c0_19, %c0_20, %c0_21] : memref<1x1x128xf32, #tpu.memory_space<vmem>>, vector<1x1x128xf32>
    %50 = vector.shape_cast %49 : vector<1x1x128xf32> to vector<1x128xf32>
    %cst_22 = arith.constant 1.000000e+00 : f32
    %51 = vector.broadcast %cst_22 : f32 to vector<1x128xf32>
    %52 = arith.subf %51, %45 : vector<1x128xf32>
    %53 = arith.cmpf ogt, %50, %52 : vector<1x128xf32>
    %54 = arith.andi %28, %53 : vector<1x128xi1>
    %55 = arith.extui %54 : vector<1x128xi1> to vector<1x128xi32>
    %c0_23 = arith.constant 0 : index
    %c0_24 = arith.constant 0 : index
    %c0_25 = arith.constant 0 : index
    %56 = vector.load %arg8[%c0_23, %c0_24, %c0_25] : memref<1x1x128xi32, #tpu.memory_space<vmem>>, vector<1x1x128xi32>
    %57 = vector.shape_cast %56 : vector<1x1x128xi32> to vector<1x128xi32>
    %58 = vector.shape_cast %55 : vector<1x128xi32> to vector<1x1x128xi32>
    tpu.vector_store %arg8[%c0_23, %c0_24, %c0_25], %58 {strides = array<i32>} : memref<1x1x128xi32, #tpu.memory_space<vmem>>, vector<1x1x128xi32>,
    %c0_26 = arith.constant 0 : index
    %c0_27 = arith.constant 0 : index
    %c0_28 = arith.constant 0 : index
    %59 = vector.load %arg6[%c0_26, %c0_27, %c0_28] : memref<1x1x128xf32, #tpu.memory_space<vmem>>, vector<1x1x128xf32>
    %60 = vector.shape_cast %59 : vector<1x1x128xf32> to vector<1x128xf32>
    %cst_29 = arith.constant 1.000000e+00 : f32
    %61 = vector.broadcast %cst_29 : f32 to vector<1x128xf32>
    %62 = arith.subf %61, %45 : vector<1x128xf32>
    %63 = arith.cmpf ogt, %60, %62 : vector<1x128xf32>
    %64 = arith.andi %28, %63 : vector<1x128xi1>
    %65 = arith.extui %64 : vector<1x128xi1> to vector<1x128xi32>
    %c0_30 = arith.constant 0 : index
    %c0_31 = arith.constant 0 : index
    %c0_32 = arith.constant 0 : index
    %66 = vector.load %arg9[%c0_30, %c0_31, %c0_32] : memref<1x1x128xi32, #tpu.memory_space<vmem>>, vector<1x1x128xi32>
    %67 = vector.shape_cast %66 : vector<1x1x128xi32> to vector<1x128xi32>
    %68 = vector.shape_cast %65 : vector<1x128xi32> to vector<1x1x128xi32>
    tpu.vector_store %arg9[%c0_30, %c0_31, %c0_32], %68 {strides = array<i32>} : memref<1x1x128xi32, #tpu.memory_space<vmem>>, vector<1x1x128xi32>,
    return
  }
  func.func @transform_0(%arg0: i32) -> (i32, i32) {
    %c0_i32 = arith.constant 0 : i32
    %c0_i32_0 = arith.constant 0 : i32
    %c0_i32_1 = arith.constant 0 : i32
    return %c0_i32, %c0_i32_0 : i32, i32
  }
  func.func @transform_1(%arg0: i32) -> (i32, i32) {
    %c0_i32 = arith.constant 0 : i32
    %c0_i32_0 = arith.constant 0 : i32
    %c0_i32_1 = arith.constant 0 : i32
    return %c0_i32, %c0_i32_0 : i32, i32
  }
  func.func @transform_2(%arg0: i32) -> (i32, i32) {
    %c0_i32 = arith.constant 0 : i32
    %c0_i32_0 = arith.constant 0 : i32
    %c0_i32_1 = arith.constant 0 : i32
    return %c0_i32, %c0_i32_0 : i32, i32
  }
  func.func @transform_3(%arg0: i32) -> (i32, i32, i32) {
    %c0_i32 = arith.constant 0 : i32
    %c0_i32_0 = arith.constant 0 : i32
    %c0_i32_1 = arith.constant 0 : i32
    return %arg0, %c0_i32, %c0_i32_0 : i32, i32, i32
  }
  func.func @transform_4(%arg0: i32) -> (i32, i32, i32) {
    %c0_i32 = arith.constant 0 : i32
    %c0_i32_0 = arith.constant 0 : i32
    %c0_i32_1 = arith.constant 0 : i32
    return %arg0, %c0_i32, %c0_i32_0 : i32, i32, i32
  }
  func.func @transform_5(%arg0: i32) -> (i32, i32, i32) {
    %c0_i32 = arith.constant 0 : i32
    %c0_i32_0 = arith.constant 0 : i32
    %c0_i32_1 = arith.constant 0 : i32
    return %arg0, %c0_i32, %c0_i32_0 : i32, i32, i32
  }
  func.func @transform_6(%arg0: i32) -> (i32, i32, i32) {
    %c0_i32 = arith.constant 0 : i32
    %c0_i32_0 = arith.constant 0 : i32
    %c0_i32_1 = arith.constant 0 : i32
    return %arg0, %c0_i32, %c0_i32_0 : i32, i32, i32
  }
  func.func @transform_7(%arg0: i32) -> (i32, i32, i32) {
    %c0_i32 = arith.constant 0 : i32
    %c0_i32_0 = arith.constant 0 : i32
    %c0_i32_1 = arith.constant 0 : i32
    return %arg0, %c0_i32, %c0_i32_0 : i32, i32, i32
  }
  func.func @transform_8(%arg0: i32) -> (i32, i32, i32) {
    %c0_i32 = arith.constant 0 : i32
    %c0_i32_0 = arith.constant 0 : i32
    %c0_i32_1 = arith.constant 0 : i32
    return %arg0, %c0_i32, %c0_i32_0 : i32, i32, i32
  }
}

</mosaic_0001>

<bundles_post_ra>
// kernel: tpu_custom_call.1
= control target key start
LH: loop header
LB: loop body
LE: loop exit
PB: predicated region body
PF: predicated region fallthrough
CT: control target
= control target key end

     0   :  { %s1239_s0 = inlined_call_operand.hbm [shape: f32[8,128], index: 0, kind: input, shape index: {}]   ;;  %s1240_s1 = inlined_call_operand.vmem [shape: f32[2,8], index: 1, kind: input, shape index: {}]   ;;  %s1241_s2 = inlined_call_operand.<no memory space> [shape: f32[1,1], index: 2, kind: input, shape index: {}]   ;;  %s1242_s3 = inlined_call_operand.vmem [shape: s32[2,2,128], index: 3, kind: input, shape index: {}]   ;;  %s1243_s4 = inlined_call_operand.vmem [shape: f32[2,1,128], index: 4, kind: input, shape index: {}]   ;;  %s1244_s5 = inlined_call_operand.vmem [shape: f32[2,1,128], index: 5, kind: input, shape index: {}]   ;;  %s1245_s6 = inlined_call_operand.hbm [shape: f32[2,1,128], index: 6, kind: output, shape index: {0}]   ;;  %s1246_s7 = inlined_call_operand.hbm [shape: s32[2,1,128], index: 7, kind: output, shape index: {1}]   ;;  %s1247_s8 = inlined_call_operand.hbm [shape: s32[2,1,128], index: 8, kind: output, shape index: {2}]  }
   0x1   :  { %1254 = sst [smem:[#allocation13_spill]] %s1239_s0  ;;  %v14_v0 = vstv %s1241_s2 }
   0x2   :  { %15 = vst [vmem:[#allocation2] sm:$0x1] %v14_v0 }
   0x3   :  { %16 = vsyncpa [#allocation4], 0 }
   0x4   :  { %17 = vsyncpa [#allocation5], 0 }
   0x5   :  { %19 = vsyncpa [#allocation5 + $0x1], 0 }
   0x6   :  { %20 = vsyncpa [#allocation8], 0 }
   0x7   :  { %22 = vsyncpa [#allocation8 + $0x1], 0  ;;  %s982_s29 = smov 0   ;;  %s984_s30 = smov 0  }
   0x8   :  { %s986_s9 = smov 0   ;;  %s988_s10 = smov 0  }
   0x9 LB: > { %s1003_s2 = sadd.s32 4294967295, %s925_s10   ;;  %s1251_s11 = sadd.s32 4294967294, %s925_s10   ;;  %s925_s10 = sphi %s988_s10, %s1272_s10   ;;  %s921_s9 = sphi %s986_s9, %s1271_s9   ;;  %s917_s30 = sphi %s984_s30, %s1270_s30   ;;  %s913_s29 = sphi %s982_s29, %s1269_s29  }
   0xa   : > { %s1007_s12 = sadd.s32 1, %s925_s10   ;;  %s176_s13 = sadd.s32 1, %s921_s9 }
   0xb   : > { %s173_s14 = ssub.s32 %s925_s10, %s1007_s12  ;;  %p186_p0 = scmp.ne.s32.totalorder %s921_s9, %s917_s30 }
   0xc   : > { %p174_p1 = scmp.eq.s32.totalorder %s173_s14, 0  ;;  %p187_p2 = scmp.eq.s32.totalorder %s1003_s2, 1 }
   0xd   : > { %p192_p3 = scmp.ne.s32.totalorder %s917_s30, %s913_s29  ;;  %p193_p4 = scmp.eq.s32.totalorder %s1251_s11, 1 }
   0xe   : > { %s1020_s15 = scalar_select %p174_p1, %s921_s9, %s176_s13  }
   0xf   : > { %p1022_p5 = por %p187_p2, %p186_p0  ;;  %p1026_p6 = por %p193_p4, %p192_p3 }
  0x10   : > { %p680_p7 = scmp.ge.s32.totalorder %s925_s10, 1  ;;  %p252_p8 = scmp.lt.s32.totalorder %s925_s10, 3 }
  0x11   : > { %s1255_s16 = scalar_select %p1022_p5, 1, 0 }
  0x12   : > { %s1256_s17 = scalar_select %p1026_p6, 1, 0 }
  0x13   : > { %p1248_p9 = scmp.eq.s32.totalorder %s1003_s2, 0  ;;  %p1033_p10 = pnand %p680_p7, %p252_p8 }
  0x14   : > { %s927_s19 = smov [#allocation3]   ;;  %s1259_s0 = sld [smem:[#allocation13_spill]] }
  0x15   : > { %s1257_s18 = scalar_select %p1033_p10, 1, 0 }
  0x16   : > { %s265_s20 = sshll.u32 %s927_s19, 4  ;;  %p710_p11 = pneg %p1033_p10  ;;  %s266_s20 = int_to_ptr.vmem [resolvable:$true] %s265_s20 }
  0x18   : > { %p1041_p12 = pnand %p1248_p9, %p710_p11 }
  0x1a   : > { %s771_s24 = scalar_lea.hbm %s1259_s0, 128  ;;  %p773_p0 = pneg %p1041_p12 }
  0x1b   : > { %p772_p13 = scmp.ne.s32.totalorder %s1259_s0, %s771_s24  ;;  %p778_p3 = scmp.lt.u32.totalorder %s771_s24, %s1259_s0 }
  0x1d   : > { %p774_p1 = pnand %p773_p0, %p772_p13 }
  0x1f   : > { %p775_p2 = pneg %p774_p1 }
  0x21   : > { %p780_p4 = pnand %p778_p3, %p775_p2 }
  0x23   : > { %783 = shalt.err (!%p780_p4)
}
  0x24   : > { %s784_s13 = scalar_lea.vmem %s266_s20, 128  ;;  %p792_p9 = scmp.lt.s32.totalorder %s266_s20, %s266_s20 }
  0x25   : > { %p785_p7 = scmp.ne.s32.totalorder %s266_s20, %s784_s13  ;;  %p793_p6 = scmp.lt.s32.totalorder %s784_s13, %s784_s13 }
  0x27   : > { %p787_p8 = pnand %p785_p7, %p773_p0  ;;  %p794_p5 = por %p793_p6, %p792_p9 }
  0x29   : > { %p788_p11 = pneg %p787_p8 }
  0x2b   : > { %p795_p10 = pnand %p794_p5, %p788_p11 }
  0x2d   : > { %798 = shalt.err (!%p795_p10)
}
  0x2e   : > { %713 = dma.hbm_to_vmem [thread:$0]  (!%p1041_p12), %s1259_s0, 128, %s266_s20, [#allocation4]  }
  0x2f   : > { %p1260_p13 = scmp.ne.s32.totalorder %s1257_s18, 0 }
  0x30   : > { %p1261_p1 = scmp.eq.s32.totalorder (!%p1260_p13), %s1003_s2, 0 }
  0x31   : > { %303 = sbr.rel (%p1260_p13) target bundleno = 665 (0x299), region = 44 }
  0x38   : > { %900 = dma.done.wait (%p1261_p1), [#allocation4], 128   ;;  %p1262_p0 = pmov %p1261_p1 }
  0x39   : > { %p349_p6 = scmp.lt.s32.totalorder %s1003_s2, 1  ;;  %v928_v1 = vmov 0.0   ;;  %vm929_vm0 = vmmov 0   ;;  %vm361_vm1 = vcmask 64512   ;;  %v360_v2 = vld [vmem:[#allocation3] sm:$0xff]  ;;  %v930_v10 = vmov 0  }
  0x3a   : > { %902 = vsyncadd (%p1262_p0), [#allocation4], 4294967168  ;;  %695 = vmatprep.subr.mxu0 %v928_v1  ;;  %697 = vmatprep.mubr.msk.f32.mxu0 %vm929_vm0, %v928_v1  ;;  %v359_v3 = vld [vmem:[%s1240_s1] sm:$0x3]  ;;  %v452_v11 = vlaneseq  ;;  %vm468_vm4 = vcmask 1040384   ;;  %s1087_s26 = sand.u32 1, %s917_s30  }
  0x3b   : > { %s1069_s21 = scalar_select %p349_p6, %s1003_s2, 1  ;;  %696 = vmatpush3.msra.mxu0 %v360_v2  ;;  %v446_v9 = vld [vmem:[#allocation2] sm:$0x1] }
  0x3c   : > { %698 = vmatmul.mubr.msk.f32.vlgmr.msra.gmra.mrb[0].mxu0 %vm361_vm1, %v359_v3  ;;  %v453_v12 = vshrl.u32 %v452_v11, 7  ;;  %v1079_v24 = vand.u32 127, %v452_v11  ;;  %s1094_s14 = sshll.u32 %s1003_s2, 4  ;;  %s336_s19 = scalar_lea.vmem [#allocation6], %s1087_s26 }
  0x3d   : > { %s685_s20 = sshll.u32 %s1069_s21, 1  ;;  %s358_s13 = scalar_lea.vmem %s1244_s5, %s1069_s21 }
  0x3e   : > { %s352_s23 = scalar_lea.vmem %s1242_s3, %s685_s20  ;;  %v454_v15 = vsub.s32 0, %v453_v12  ;;  %vm466_vm3 = vcmp.lt.s32.totalorder %v1079_v24, 16  ;;  %s515_s20 = sshll.u32 %s336_s19, 4  ;;  %v489_v37 = vld [vmem:[%s358_s13] sm:$0x1]  ;;  %s1107_s20 = int_to_ptr.vmem [resolvable:$true] %s515_s20 }
  0x3f   : > { %v435_v4 = vld [vmem:[%s352_s23] sm:$0x3]  ;;  %s355_s23 = scalar_lea.vmem %s1243_s4, %s1069_s21  ;;  %s1105_s27 = scalar_lea.hbm %s1245_s6, %s1094_s14 }
  0x40   : > { %vm436_vm2 = vcmp.lt.s32.totalorder %v435_v4, 0  ;;  %v437_v5 = vadd.s32 128, %v435_v4  ;;  %v483_v39 = vld [vmem:[%s355_s23] sm:$0x1]  ;;  %s1253_s21 = scalar_lea.vmem [#allocation7], %s1087_s26  ;;  %s1252_s18 = scalar_lea.vmem [#allocation9], %s1087_s26 }
  0x41   : > { %s1115_s22 = sshll.u32 %s1253_s21, 4  ;;  %s1120_s24 = sshll.u32 %s1252_s18, 4  ;;  %s1153_s22 = int_to_ptr.vmem [resolvable:$true] %s1115_s22  ;;  %s1165_s24 = int_to_ptr.vmem [resolvable:$true] %s1120_s24 }
  0x42   : > { %v438_v6 = vsel %vm436_vm2, %v437_v5, %v435_v4  ;;  %s495_s25 = scalar_lea.sflag [#allocation5], %s1087_s26  ;;  %s799_s11 = scalar_lea.vmem %s1107_s20, 16 }
  0x43   : > { %763 = vset.pattern.permute.xlu0 %v438_v6  ;;  %p800_p5 = scmp.ne.s32.totalorder %s1107_s20, %s799_s11  ;;  %p1263_p9 = scmp.ne.s32.totalorder %s1255_s16, 0 }
  0x44   : > { %s931_s13 = smov [#allocation6]  }
  0x45   : > { %p801_p10 = pnand %p800_p5, %p1263_p9  ;;  %s803_s23 = sshll.u32 %s931_s13, 4  ;;  %s804_s23 = int_to_ptr.vmem [resolvable:$false] %s803_s23 }
  0x46   : > { %s805_s28 = scalar_lea.vmem %s804_s23, 32  ;;  %p806_p2 = scmp.lt.s32.totalorder %s1107_s20, %s804_s23 }
  0x47   : > { %p802_p12 = pneg %p801_p10  ;;  %p807_p3 = scmp.lt.s32.totalorder %s805_s28, %s799_s11 }
  0x49   : > { %p808_p4 = por %p807_p3, %p806_p2 }
  0x4b   : > { %p809_p7 = pnand %p808_p4, %p802_p12 }
 0x10f   : > { %v431_v7 = vpop.f32.mrb[0].mxu0 }
 0x110   : > { %440 = vperm.xlu0 %763, %v431_v7   ;;  %v699_v8 = vpop.f32.mrb[1].mxu0 }
 0x114   : > { %764 = vset.pattern.permute.xlu0 %v930_v10 }
 0x115   : > { %449 = vperm.xlu0 %764, %v446_v9  }
 0x18f   : > { %v441_v13 = vpop.permute.xlu0 %440 }
 0x190   : > { %v443_v14 = vrot.slane %v441_v13, 1 }
 0x192   : > { %v445_v17 = vadd.f32 %v443_v14, %v441_v13 }
 0x194   : > { %v450_v16 = vpop.permute.xlu0 %449 }
 0x195   : > { %v455_v18 = vrot.slane %v450_v16, %v454_v15 }
 0x197   : > { %v456_v19 = vadd.f32 %v455_v18, %v445_v17 }
 0x199   : > { %v457_v20 = vmax.f32 %v456_v19, 0.0 }
 0x19b   : > { %v687_v21 = vmul.f32 -1.442695, %v457_v20 }
 0x19d   : > { %765 = vpow2.f32 %v687_v21 }
 0x1a7   : > { %v766_v22 = vpop.eup %765 }
 0x1a8   : > { %v461_v23 = vadd.f32 1.0, %v766_v22 }
 0x1aa   : > { %767 = vrcp.f32 %v461_v23 }
 0x1b4   : > { %v768_v25 = vpop.eup %767 }
 0x1b5   : > { %v467_v26 = vsel %vm466_vm3, %v768_v25, inf  ;;  %v472_v28 = vsel %vm466_vm3, %v768_v25, -inf }
 0x1b6   : > { %v469_v27 = vsel %vm468_vm4, %v467_v26, inf  ;;  %v473_v29 = vsel %vm468_vm4, %v472_v28, -inf }
 0x1b7   : > { %470 = vmin.xlane.f32.xlu1 %v469_v27 }
 0x1bb   : > { %474 = vmax.xlane.f32.xlu1 %v473_v29 }
 0x244   : > { %v471_v30 = vpop.xlane.xlu1 %470 }
 0x245   : > { %v476_v34 = vsub.f32 %v768_v25, %v471_v30 }
 0x248   : > { %v475_v31 = vpop.xlane.xlu1 %474 }
 0x249   : > { %v477_v32 = vsub.f32 %v475_v31, %v471_v30 }
 0x24b   : > { %v478_v33 = vadd.f32 1e-06, %v477_v32 }
 0x24d   : > { %769 = vrcp.f32 %v478_v33 }
 0x257   : > { %v770_v35 = vpop.eup %769 }
 0x258   : > { %v480_v36 = vmul.f32 %v770_v35, %v476_v34 }
 0x25a   : > { %v481_v38 = vsel %vm466_vm3, %v480_v36, 0.0 }
 0x25b   : > { %v484_v40 = vsub.f32 1.0, %v481_v38  ;;  %482 = vst [vmem:[%s336_s19] sm:$0x1] %v481_v38 }
 0x25c   : > { %812 = shalt.err (!%p809_p7)
}
 0x25d   : > { %s813_s19 = scalar_lea.hbm %s1105_s27, 16  ;;  %s817_s13 = scalar_lea.hbm %s1245_s6, 32 }
 0x25e   : > { %p814_p8 = scmp.ne.s32.totalorder %s1105_s27, %s813_s19  ;;  %p818_p1 = scmp.lt.u32.totalorder %s1105_s27, %s1245_s6 }
 0x25f   : > { %p819_p0 = scmp.lt.u32.totalorder %s817_s13, %s813_s19  ;;  %p821_p5 = scmp.lt.u32.totalorder %s813_s19, %s1105_s27 }
 0x260   : > { %p815_p11 = pnand %p814_p8, %p1263_p9 }
 0x261   : > { %p820_p6 = por %p819_p0, %p818_p1 }
 0x262   : > { %p816_p13 = pneg %p815_p11 }
 0x263   : > { %p822_p10 = por %p821_p5, %p820_p6 }
 0x265   : > { %p823_p12 = pnand %p822_p10, %p816_p13 }
 0x267   : > { %826 = shalt.err (!%p823_p12)
}
 0x268   : > { %704 = dma.vmem_to_hbm [thread:$0]  (%p1263_p9), %s1107_s20, 16, %s1105_s27, %s495_s25   ;;  %vm485_vm5 = vcmp.gt.f32.partialorder %v483_v39, %v484_v40  ;;  %vm490_vm6 = vcmp.gt.f32.partialorder %v489_v37, %v484_v40 }
 0x269   : > { %vm486_vm7 = vmand %vm466_vm3, %vm485_vm5  ;;  %s1150_s28 = scalar_lea.hbm %s1246_s7, %s1094_s14  ;;  %s1162_s21 = scalar_lea.hbm %s1247_s8, %s1094_s14 }
 0x26a   : > { %v487_v41 = vsel %vm486_vm7, 1, %v930_v10  ;;  %vm491_vm8 = vmand %vm466_vm3, %vm490_vm6  ;;  %s1264_s18 = scalar_lea.vmem [#allocation7], %s1087_s26  ;;  %s1265_s25 = sand.u32 1, %s1003_s2  }
 0x26b   : > { %488 = vst [vmem:[%s1264_s18] sm:$0x1] %v487_v41  ;;  %v492_v42 = vsel %vm491_vm8, 1, %v930_v10  ;;  %s1172_s19 = scalar_lea.sflag [#allocation8], %s1265_s25  ;;  %s827_s13 = scalar_lea.vmem %s1153_s22, 16 }
 0x26c   : > { %p828_p2 = scmp.ne.s32.totalorder %s1153_s22, %s827_s13  ;;  %s932_s23 = smov [#allocation7]  }
 0x26d   : > { %s831_s0 = sshll.u32 %s932_s23, 4  ;;  %s832_s0 = int_to_ptr.vmem [resolvable:$false] %s831_s0 }
 0x26e   : > { %p829_p3 = pnand %p828_p2, %p1263_p9  ;;  %s833_s11 = scalar_lea.vmem %s832_s0, 32 }
 0x26f   : > { %p834_p7 = scmp.lt.s32.totalorder %s1153_s22, %s832_s0  ;;  %p835_p8 = scmp.lt.s32.totalorder %s833_s11, %s827_s13 }
 0x270   : > { %p830_p4 = pneg %p829_p3 }
 0x271   : > { %p836_p11 = por %p835_p8, %p834_p7 }
 0x273   : > { %p837_p13 = pnand %p836_p11, %p830_p4 }
 0x275   : > { %840 = shalt.err (!%p837_p13)
}
 0x276   : > { %s841_s2 = scalar_lea.hbm %s1150_s28, 16  ;;  %s845_s27 = scalar_lea.hbm %s1246_s7, 32 }
 0x277   : > { %p842_p1 = scmp.ne.s32.totalorder %s1150_s28, %s841_s2  ;;  %p846_p5 = scmp.lt.u32.totalorder %s1150_s28, %s1246_s7 }
 0x278   : > { %p847_p10 = scmp.lt.u32.totalorder %s845_s27, %s841_s2  ;;  %p849_p2 = scmp.lt.u32.totalorder %s841_s2, %s1150_s28 }
 0x279   : > { %p843_p0 = pnand %p842_p1, %p1263_p9 }
 0x27a   : > { %p848_p12 = por %p847_p10, %p846_p5 }
 0x27b   : > { %p844_p6 = pneg %p843_p0 }
 0x27c   : > { %p850_p3 = por %p849_p2, %p848_p12 }
 0x27e   : > { %p851_p4 = pnand %p850_p3, %p844_p6 }
 0x280   : > { %854 = shalt.err (!%p851_p4)
}
 0x281   : > { %705 = dma.vmem_to_hbm [thread:$0]  (%p1263_p9), %s1153_s22, 16, %s1150_s28, %s1172_s19  }
 0x282   : > { %s1266_s13 = scalar_lea.vmem [#allocation9], %s1087_s26  ;;  %s855_s23 = scalar_lea.vmem %s1165_s24, 16 }
 0x283   : > { %493 = vst [vmem:[%s1266_s13] sm:$0x1] %v492_v42  ;;  %p856_p7 = scmp.ne.s32.totalorder %s1165_s24, %s855_s23  ;;  %s933_s0 = smov [#allocation9]  }
 0x284   : > { %s859_s11 = sshll.u32 %s933_s0, 4  ;;  %s860_s11 = int_to_ptr.vmem [resolvable:$false] %s859_s11 }
 0x285   : > { %p857_p8 = pnand %p856_p7, %p1263_p9  ;;  %s861_s2 = scalar_lea.vmem %s860_s11, 32 }
 0x286   : > { %p862_p13 = scmp.lt.s32.totalorder %s1165_s24, %s860_s11  ;;  %p863_p1 = scmp.lt.s32.totalorder %s861_s2, %s855_s23 }
 0x287   : > { %p858_p11 = pneg %p857_p8 }
 0x288   : > { %p864_p0 = por %p863_p1, %p862_p13 }
 0x28a   : > { %p865_p6 = pnand %p864_p0, %p858_p11 }
 0x28c   : > { %868 = shalt.err (!%p865_p6)
}
 0x28d   : > { %s869_s26 = scalar_lea.hbm %s1162_s21, 16  ;;  %s873_s14 = scalar_lea.hbm %s1247_s8, 32 }
 0x28e   : > { %p870_p5 = scmp.ne.s32.totalorder %s1162_s21, %s869_s26  ;;  %p874_p2 = scmp.lt.u32.totalorder %s1162_s21, %s1247_s8 }
 0x28f   : > { %p875_p3 = scmp.lt.u32.totalorder %s873_s14, %s869_s26  ;;  %p877_p7 = scmp.lt.u32.totalorder %s869_s26, %s1162_s21 }
 0x290   : > { %p871_p10 = pnand %p870_p5, %p1263_p9 }
 0x291   : > { %p876_p4 = por %p875_p3, %p874_p2 }
 0x292   : > { %p872_p12 = pneg %p871_p10 }
 0x293   : > { %p878_p8 = por %p877_p7, %p876_p4 }
 0x295   : > { %p879_p11 = pnand %p878_p8, %p872_p12 }
 0x297   : > { %882 = shalt.err (!%p879_p11)
}
 0x298   : > { %706 = dma.vmem_to_hbm [thread:$0]  (%p1263_p9), %s1165_s24, 16, %s1162_s21, %s1172_s19  }
 0x299 PF: > { %p726_p13 = scmp.ge.s32.totalorder %s925_s10, 2  ;;  %s553_s18 = sand.u32 1, %s913_s29  }
 0x29a   : > { %p1267_p1 = scmp.ne.s32.totalorder %s1256_s17, 0  ;;  %s554_s25 = scalar_lea.sflag [#allocation5], %s553_s18 }
 0x29c   : > { %p715_p0 = pnand %p726_p13, %p1267_p1 }
 0x29e   : > { %904 = dma.done.wait (!%p715_p0), %s554_s25, 16  }
 0x29f   : > { %906 = vsyncadd (!%p715_p0), %s554_s25, 4294967280  ;;  %s1268_s13 = sadd.s32 4294967294, %s925_s10  }
 0x2a0   : > { %s561_s23 = sand.u32 1, %s1268_s13  }
 0x2a1   : > { %s562_s0 = scalar_lea.sflag [#allocation8], %s561_s23 }
 0x2a2   : > { %908 = dma.done.wait (!%p715_p0), %s562_s0, 32  }
 0x2a3   : > { %910 = vsyncadd (!%p715_p0), %s562_s0, 4294967264  ;;  %p25_p9 = scmp.ge.s32.totalorder %s1007_s12, 4   ;;  %s1269_s29 = smov %s917_s30 }
 0x2a4   : > { %s1270_s30 = smov %s921_s9  ;;  %s1271_s9 = smov %s1020_s15 }
 0x2a5   : > { %s1272_s10 = smov %s1007_s12  ;;  %27 = sbr.rel (!%p25_p9) target bundleno = 9 (0x9), region = 122 }
 0x2ac   :  { %574 = vsyncpa [#allocation4], 1 }
 0x2ad   :  { %576 = vsyncpa [#allocation4 + $0x1], 1 }
 0x2ae   :  { %577 = vsyncpa [#allocation5], 1 }
 0x2af   :  { %579 = vsyncpa [#allocation5 + $0x1], 1 }
 0x2b0   :  { %580 = vsyncpa [#allocation8], 1 }
 0x2b1   :  { %582 = vsyncpa [#allocation8 + $0x1], 1 }

</bundles_post_ra>
